<compile_context>
chip_gen: v6e
topology: v6e:2x2x1
jax: 0.10.0
libtpu: 0.0.40
codegen_flags: <defaults>
</compile_context>

<pallas_src>
import functools

import jax
import jax.numpy as jnp
from jax.experimental import pallas as pl
from jax.experimental.pallas import tpu as pltpu

_SUBLANE_BF16 = 16   # bf16 sublane packing -> batch tiles kept multiples of 16


def _round_up(x, m):
    return ((x + m - 1) // m) * m


def _cdiv(a, b):
    return (a + b - 1) // b


def _default_batch_tile(n):
    """Batch tile: one block for tiny problems; otherwise ~512-row tiles chosen
    so the tiled extent hugs n and the grid has an even (>=2) number of steps
    (lets v7x's two TensorCores split the "parallel" batch axis evenly)."""
    n16 = _round_up(max(n, _SUBLANE_BF16), _SUBLANE_BF16)
    if n16 <= 256:
        return n16                       # single grid step, no per-step overhead
    steps = max(2, _cdiv(n16, 512))      # ~512-row target (~85% of HBM roofline)
    if steps % 2:
        steps += 1                       # even split across 2 TCs on v7x
    return _round_up(_cdiv(n16, steps), _SUBLANE_BF16)


# -----------------------------------------------------------------------------
# Kernel: a fused "Sequential" of layers, unrolled at trace time.
# -----------------------------------------------------------------------------
def _sequential_kernel(layer_types, *refs):
    """refs = (x_ref, *param_refs, out_ref). layer_types is a static tuple.

    Rows beyond the true batch in the (partial) last grid block hold stale
    VMEM data; they are computed but never written back (Pallas masks the
    out-of-bounds part of the output block) and rows are independent, so they
    cannot contaminate valid outputs.
    """
    x_ref = refs[0]
    out_ref = refs[-1]
    param_refs = refs[1:-1]

    x = x_ref[...]                        # bf16 straight from HBM (layer-0 cast is a no-op)
    p = 0
    for lt in layer_types:
        if lt == "linear":
            w = param_refs[p][...]        # bf16 weights, VMEM-resident across grid steps
            b = param_refs[p + 1][...]    # f32 bias
            p += 2
            # bf16 x bf16 -> f32 accumulate on the MXU.
            acc = jnp.dot(x.astype(jnp.bfloat16), w,
                          preferred_element_type=jnp.float32)
            x = acc + b                   # epilogue stays f32 (v5e has no bf16 VPU)
        elif lt == "relu":
            x = jnp.maximum(x, 0.0)
        else:
            raise ValueError(f"unknown layer type {lt}")
    out_ref[...] = x.astype(out_ref.dtype)


class PallasSequential:
    """Mirror of strengthnet.Sequential: chains layers, fused into one kernel.

    Layers are ('linear', W, b) or ('relu',).  None of the layers used here
    take `xlens`, so it is accepted and ignored (matching the signature-check
    dispatch in the PyTorch module).
    """
    # TODO(synk): introspection=True (collecting per-layer hidden states `hs`)
    # would require one kernel output per layer; not implemented here.

    def __init__(self, *layers, introspection: bool = False):
        self.layers = layers
        self.introspection = introspection
        self.layer_types = tuple(l[0] for l in layers)

        linear_layers = [l for l in layers if l[0] == "linear"]
        assert linear_layers, "need at least one linear layer"
        self.d_in = int(linear_layers[0][1].shape[0])
        self.d_out = int(linear_layers[-1][1].shape[1])

        # No feature-dim padding: every weight/bias block uses the true extent
        # (full-array blocks are legal; Mosaic pads lanes internally in VMEM),
        # so HBM traffic is exactly the useful bytes.  Weights are pre-cast
        # ONCE to bf16 (MXU operand dtype); biases stay f32.
        self.params = []
        flops_per_row = 0
        max_width = self.d_in
        for l in layers:
            if l[0] == "linear":
                w, b = l[1], l[2]
                assert b.ndim == 2 and b.shape[0] == 1
                f_in, f_out = int(w.shape[0]), int(w.shape[1])
                self.params.append(jnp.asarray(w, jnp.bfloat16))
                self.params.append(jnp.asarray(b, jnp.float32))
                flops_per_row += 2 * f_in * f_out
                max_width = max(max_width, f_out)
            elif l[0] == "relu":
                pass
            else:
                raise ValueError(f"unknown layer type {l[0]}")

        self._flops_per_row = flops_per_row
        self._max_width = max_width
        self._weight_bytes = sum(int(p.size) * p.dtype.itemsize
                                 for p in self.params)

    # -------------------------------------------------------------------------
    def __call__(self, x, xlens=None, *, batch_tile=None, out_dtype=None):
        # xlens accepted and ignored: none of these layers take xlens.
        n, d_in = x.shape
        assert d_in == self.d_in
        out_dtype = jnp.dtype(x.dtype if out_dtype is None else out_dtype)

        if batch_tile is None:
            batch_tile = _default_batch_tile(n)
        batch_tile = _round_up(int(batch_tile), _SUBLANE_BF16)

        # Single bf16 cast of the activations (fuses into the producer under
        # jit): halves input HBM bytes and the double-buffered input tiles.
        x_bf = x.astype(jnp.bfloat16)

        try:
            return self._invoke(x_bf, n, batch_tile, out_dtype,
                                use_buffered=True)
        except Exception:
            # Fallback if single-buffered weight specs (pipeline_mode=
            # pl.Buffered(1)) are not supported by the installed Pallas.
            return self._invoke(x_bf, n, batch_tile, out_dtype,
                                use_buffered=False)

    # -------------------------------------------------------------------------
    def _invoke(self, x_bf, n, batch_tile, out_dtype, *, use_buffered):
        d_in, d_out = self.d_in, self.d_out
        grid = (_cdiv(n, batch_tile),)    # ragged last block handled by Pallas

        x_spec = pl.BlockSpec((batch_tile, d_in), lambda i: (i, 0))
        out_spec = pl.BlockSpec((batch_tile, d_out), lambda i: (i, 0))

        # Weights/biases: full-array blocks with constant index_map stay
        # VMEM-resident across grid steps (never re-DMA'd).  Single-buffer them
        # so they don't pay 2x VMEM (matters on v7x's 64 MiB VMEM).
        if use_buffered:
            param_specs = [
                pl.BlockSpec(p.shape, lambda i: (0, 0),
                             pipeline_mode=pl.Buffered(buffer_count=1))
                for p in self.params]
            weight_mult = 1
        else:
            param_specs = [pl.BlockSpec(p.shape, lambda i: (0, 0))
                           for p in self.params]
            weight_mult = 2

        # VMEM budget: double-buffered activation tiles + fused-intermediate
        # headroom + resident weights; capped well below v7x's 64 MiB physical
        # VMEM so Mosaic keeps headroom for internal scratch.
        act_bytes = 2 * batch_tile * (d_in * 2 + d_out * out_dtype.itemsize)
        inter_bytes = 3 * batch_tile * _round_up(self._max_width, 128) * 4
        needed = (weight_mult * self._weight_bytes + act_bytes + inter_bytes
                  + (2 << 20))
        vmem_limit = int(min(48 << 20, max(32 << 20, needed)))
        # TODO(synk): if a large instantiation's weight stack outgrows this
        # budget (esp. v7x), stream weights over a reduction grid axis instead
        # of keeping them VMEM-resident.

        cost = pl.CostEstimate(
            flops=int(self._flops_per_row * n),
            transcendentals=0,
            bytes_accessed=int(n * d_in * 2 + n * d_out * out_dtype.itemsize
                               + self._weight_bytes),
        )

        kernel = functools.partial(_sequential_kernel, self.layer_types)

        return pl.pallas_call(
            kernel,
            out_shape=jax.ShapeDtypeStruct((n, d_out), out_dtype),
            grid_spec=pltpu.PrefetchScalarGridSpec(
                num_scalar_prefetch=0,
                grid=grid,
                in_specs=[x_spec] + param_specs,
                out_specs=out_spec,
            ),
            compiler_params=pltpu.CompilerParams(
                dimension_semantics=("parallel",),
                vmem_limit_bytes=vmem_limit,
            ),
            cost_estimate=cost,
        )(x_bf, *self.params)


# -----------------------------------------------------------------------------
# Deterministic parameter init (nn.Linear-style uniform(-1/sqrt(fan_in), ...))
# -----------------------------------------------------------------------------
def init_linear(key, fan_in, fan_out, dtype=jnp.float32):
    kw, kb = jax.random.split(key)
    bound = 1.0 / jnp.sqrt(jnp.float32(fan_in))
    w = jax.random.uniform(kw, (fan_in, fan_out), dtype, -bound, bound)
    b = jax.random.uniform(kb, (1, fan_out), dtype, -bound, bound)
    return w, b


def reference_forward(x, layers):
    """Plain-JAX reference of the same chain (bf16 MXU operands, f32 accum)."""
    h = x
    for l in layers:
        if l[0] == "linear":
            w = l[1].astype(jnp.bfloat16)
            h = jnp.dot(h.astype(jnp.bfloat16), w,
                        preferred_element_type=jnp.float32)
            h = h + l[2].astype(jnp.float32)
        elif l[0] == "relu":
            h = jnp.maximum(h, 0.0)
    return h.astype(x.dtype)


if __name__ == "__main__":
    key = jax.random.PRNGKey(0)
    k_x, k_x2, k_l1, k_l2 = jax.random.split(key, 4)

    N, D_IN, HIDDEN, D_OUT = 16, 32, 64, 16

    x = jax.random.normal(k_x, (N, D_IN), jnp.float32)

    w1, b1 = init_linear(k_l1, D_IN, HIDDEN)
    w2, b2 = init_linear(k_l2, HIDDEN, D_OUT)

    model = PallasSequential(
        ("linear", w1, b1),
        ("relu",),
        ("linear", w2, b2),
    )

    # Tiny-batch path: single grid step, true (unpadded) feature widths.
    y = model(x, xlens=None)  # xlens accepted but unused (no layer takes it)
    y = jax.block_until_ready(y)
    y_ref = reference_forward(x, model.layers)
    assert y.shape == (N, D_OUT)
    assert jnp.allclose(y, y_ref, atol=1e-4, rtol=1e-4)

    # Larger, non-multiple batch: exercises ~304-row tiles, 2 grid steps and
    # the ragged (partial) last block with masked write-back.
    N2 = 600
    x2 = jax.random.normal(k_x2, (N2, D_IN), jnp.float32)
    y2 = jax.block_until_ready(model(x2))
    y2_ref = reference_forward(x2, model.layers)
    assert y2.shape == (N2, D_OUT)
    assert jnp.allclose(y2, y2_ref, atol=1e-4, rtol=1e-4)

    print("KERNEL_OK")
</pallas_src>

<mosaic_0001>
module attributes {stable_mosaic.version = 11 : i64} {
  func.func @_sequential_kernel(%arg0: i32, %arg1: memref<16x32xbf16, #tpu.memory_space<vmem>>, %arg2: memref<32x64xbf16, #tpu.memory_space<vmem>>, %arg3: memref<1x64xf32, #tpu.memory_space<vmem>>, %arg4: memref<64x16xbf16, #tpu.memory_space<vmem>>, %arg5: memref<1x16xf32, #tpu.memory_space<vmem>>, %arg6: memref<16x16xf32, #tpu.memory_space<vmem>>) attributes {dimension_semantics = [#tpu.dimension_semantics<parallel>], iteration_bounds = array<i64: 1>, scalar_prefetch = 0 : i64, scratch_operands = 0 : i64, tpu.core_type = #tpu.core_type<tc>, window_params = [{transform_indices = @transform_0, window_bounds = array<i64: 16, 32>}, {pipeline_mode = #tpu.pipeline_mode<synchronous>, transform_indices = @transform_1, window_bounds = array<i64: 32, 64>}, {pipeline_mode = #tpu.pipeline_mode<synchronous>, transform_indices = @transform_2, window_bounds = array<i64: 1, 64>}, {pipeline_mode = #tpu.pipeline_mode<synchronous>, transform_indices = @transform_3, window_bounds = array<i64: 64, 16>}, {pipeline_mode = #tpu.pipeline_mode<synchronous>, transform_indices = @transform_4, window_bounds = array<i64: 1, 16>}, {transform_indices = @transform_5, window_bounds = array<i64: 16, 16>}]} {
    %c0 = arith.constant 0 : index
    %c0_0 = arith.constant 0 : index
    %0 = vector.load %arg1[%c0, %c0_0] : memref<16x32xbf16, #tpu.memory_space<vmem>>, vector<16x32xbf16>
    %c0_1 = arith.constant 0 : index
    %c0_2 = arith.constant 0 : index
    %1 = vector.load %arg2[%c0_1, %c0_2] : memref<32x64xbf16, #tpu.memory_space<vmem>>, vector<32x64xbf16>
    %c0_3 = arith.constant 0 : index
    %c0_4 = arith.constant 0 : index
    %2 = vector.load %arg3[%c0_3, %c0_4] : memref<1x64xf32, #tpu.memory_space<vmem>>, vector<1x64xf32>
    %cst = arith.constant dense<0.000000e+00> : vector<16x64xf32>
    %3 = tpu.matmul %0, %1, %cst {dimension_numbers = #tpu.dot_dimension_numbers<[1], [0], [0], [1], [0, 0, 1, 1], [], []>} : vector<16x32xbf16>, vector<32x64xbf16>, vector<16x64xf32> -> vector<16x64xf32>
    %4 = vector.broadcast %2 : vector<1x64xf32> to vector<16x64xf32>
    %5 = arith.addf %3, %4 : vector<16x64xf32>
    %cst_5 = arith.constant 0.000000e+00 : f32
    %6 = vector.broadcast %cst_5 : f32 to vector<16x64xf32>
    %7 = arith.maximumf %5, %6 : vector<16x64xf32>
    %c0_6 = arith.constant 0 : index
    %c0_7 = arith.constant 0 : index
    %8 = vector.load %arg4[%c0_6, %c0_7] : memref<64x16xbf16, #tpu.memory_space<vmem>>, vector<64x16xbf16>
    %c0_8 = arith.constant 0 : index
    %c0_9 = arith.constant 0 : index
    %9 = vector.load %arg5[%c0_8, %c0_9] : memref<1x16xf32, #tpu.memory_space<vmem>>, vector<1x16xf32>
    %10 = arith.truncf %7 : vector<16x64xf32> to vector<16x64xbf16>
    %cst_10 = arith.constant dense<0.000000e+00> : vector<16x16xf32>
    %11 = tpu.matmul %10, %8, %cst_10 {dimension_numbers = #tpu.dot_dimension_numbers<[1], [0], [0], [1], [0, 0, 1, 1], [], []>} : vector<16x64xbf16>, vector<64x16xbf16>, vector<16x16xf32> -> vector<16x16xf32>
    %12 = vector.broadcast %9 : vector<1x16xf32> to vector<16x16xf32>
    %13 = arith.addf %11, %12 : vector<16x16xf32>
    %c0_11 = arith.constant 0 : index
    %c0_12 = arith.constant 0 : index
    %14 = vector.load %arg6[%c0_11, %c0_12] : memref<16x16xf32, #tpu.memory_space<vmem>>, vector<16x16xf32>
    tpu.vector_store %arg6[%c0_11, %c0_12], %13 {strides = array<i32>} : memref<16x16xf32, #tpu.memory_space<vmem>>, vector<16x16xf32>,
    return
  }
  func.func @transform_0(%arg0: i32) -> (i32, i32) {
    %c0_i32 = arith.constant 0 : i32
    %c0_i32_0 = arith.constant 0 : i32
    return %arg0, %c0_i32 : i32, i32
  }
  func.func @transform_1(%arg0: i32) -> (i32, i32) {
    %c0_i32 = arith.constant 0 : i32
    %c0_i32_0 = arith.constant 0 : i32
    %c0_i32_1 = arith.constant 0 : i32
    return %c0_i32, %c0_i32_0 : i32, i32
  }
  func.func @transform_2(%arg0: i32) -> (i32, i32) {
    %c0_i32 = arith.constant 0 : i32
    %c0_i32_0 = arith.constant 0 : i32
    %c0_i32_1 = arith.constant 0 : i32
    return %c0_i32, %c0_i32_0 : i32, i32
  }
  func.func @transform_3(%arg0: i32) -> (i32, i32) {
    %c0_i32 = arith.constant 0 : i32
    %c0_i32_0 = arith.constant 0 : i32
    %c0_i32_1 = arith.constant 0 : i32
    return %c0_i32, %c0_i32_0 : i32, i32
  }
  func.func @transform_4(%arg0: i32) -> (i32, i32) {
    %c0_i32 = arith.constant 0 : i32
    %c0_i32_0 = arith.constant 0 : i32
    %c0_i32_1 = arith.constant 0 : i32
    return %c0_i32, %c0_i32_0 : i32, i32
  }
  func.func @transform_5(%arg0: i32) -> (i32, i32) {
    %c0_i32 = arith.constant 0 : i32
    %c0_i32_0 = arith.constant 0 : i32
    return %arg0, %c0_i32 : i32, i32
  }
}

module attributes {stable_mosaic.version = 11 : i64} {
  func.func @_sequential_kernel(%arg0: i32, %arg1: memref<16x32xbf16, #tpu.memory_space<vmem>>, %arg2: memref<32x64xbf16, #tpu.memory_space<vmem>>, %arg3: memref<1x64xf32, #tpu.memory_space<vmem>>, %arg4: memref<64x16xbf16, #tpu.memory_space<vmem>>, %arg5: memref<1x16xf32, #tpu.memory_space<vmem>>, %arg6: memref<16x16xf32, #tpu.memory_space<vmem>>) attributes {dimension_semantics = [#tpu.dimension_semantics<parallel>], iteration_bounds = array<i64: 1>, scalar_prefetch = 0 : i64, scratch_operands = 0 : i64, tpu.core_type = #tpu.core_type<tc>, window_params = [{transform_indices = @transform_0, window_bounds = array<i64: 16, 32>}, {pipeline_mode = #tpu.pipeline_mode<synchronous>, transform_indices = @transform_1, window_bounds = array<i64: 32, 64>}, {pipeline_mode = #tpu.pipeline_mode<synchronous>, transform_indices = @transform_2, window_bounds = array<i64: 1, 64>}, {pipeline_mode = #tpu.pipeline_mode<synchronous>, transform_indices = @transform_3, window_bounds = array<i64: 64, 16>}, {pipeline_mode = #tpu.pipeline_mode<synchronous>, transform_indices = @transform_4, window_bounds = array<i64: 1, 16>}, {transform_indices = @transform_5, window_bounds = array<i64: 16, 16>}]} {
    %c0 = arith.constant 0 : index
    %c0_0 = arith.constant 0 : index
    %0 = vector.load %arg1[%c0, %c0_0] : memref<16x32xbf16, #tpu.memory_space<vmem>>, vector<16x32xbf16>
    %c0_1 = arith.constant 0 : index
    %c0_2 = arith.constant 0 : index
    %1 = vector.load %arg2[%c0_1, %c0_2] : memref<32x64xbf16, #tpu.memory_space<vmem>>, vector<32x64xbf16>
    %c0_3 = arith.constant 0 : index
    %c0_4 = arith.constant 0 : index
    %2 = vector.load %arg3[%c0_3, %c0_4] : memref<1x64xf32, #tpu.memory_space<vmem>>, vector<1x64xf32>
    %cst = arith.constant dense<0.000000e+00> : vector<16x64xf32>
    %3 = tpu.matmul %0, %1, %cst {dimension_numbers = #tpu.dot_dimension_numbers<[1], [0], [0], [1], [0, 0, 1, 1], [], []>} : vector<16x32xbf16>, vector<32x64xbf16>, vector<16x64xf32> -> vector<16x64xf32>
    %4 = vector.broadcast %2 : vector<1x64xf32> to vector<16x64xf32>
    %5 = arith.addf %3, %4 : vector<16x64xf32>
    %cst_5 = arith.constant 0.000000e+00 : f32
    %6 = vector.broadcast %cst_5 : f32 to vector<16x64xf32>
    %7 = arith.maximumf %5, %6 : vector<16x64xf32>
    %c0_6 = arith.constant 0 : index
    %c0_7 = arith.constant 0 : index
    %8 = vector.load %arg4[%c0_6, %c0_7] : memref<64x16xbf16, #tpu.memory_space<vmem>>, vector<64x16xbf16>
    %c0_8 = arith.constant 0 : index
    %c0_9 = arith.constant 0 : index
    %9 = vector.load %arg5[%c0_8, %c0_9] : memref<1x16xf32, #tpu.memory_space<vmem>>, vector<1x16xf32>
    %10 = arith.truncf %7 : vector<16x64xf32> to vector<16x64xbf16>
    %cst_10 = arith.constant dense<0.000000e+00> : vector<16x16xf32>
    %11 = tpu.matmul %10, %8, %cst_10 {dimension_numbers = #tpu.dot_dimension_numbers<[1], [0], [0], [1], [0, 0, 1, 1], [], []>} : vector<16x64xbf16>, vector<64x16xbf16>, vector<16x16xf32> -> vector<16x16xf32>
    %12 = vector.broadcast %9 : vector<1x16xf32> to vector<16x16xf32>
    %13 = arith.addf %11, %12 : vector<16x16xf32>
    %c0_11 = arith.constant 0 : index
    %c0_12 = arith.constant 0 : index
    %14 = vector.load %arg6[%c0_11, %c0_12] : memref<16x16xf32, #tpu.memory_space<vmem>>, vector<16x16xf32>
    tpu.vector_store %arg6[%c0_11, %c0_12], %13 {strides = array<i32>} : memref<16x16xf32, #tpu.memory_space<vmem>>, vector<16x16xf32>,
    return
  }
  func.func @transform_0(%arg0: i32) -> (i32, i32) {
    %c0_i32 = arith.constant 0 : i32
    %c0_i32_0 = arith.constant 0 : i32
    return %arg0, %c0_i32 : i32, i32
  }
  func.func @transform_1(%arg0: i32) -> (i32, i32) {
    %c0_i32 = arith.constant 0 : i32
    %c0_i32_0 = arith.constant 0 : i32
    %c0_i32_1 = arith.constant 0 : i32
    return %c0_i32, %c0_i32_0 : i32, i32
  }
  func.func @transform_2(%arg0: i32) -> (i32, i32) {
    %c0_i32 = arith.constant 0 : i32
    %c0_i32_0 = arith.constant 0 : i32
    %c0_i32_1 = arith.constant 0 : i32
    return %c0_i32, %c0_i32_0 : i32, i32
  }
  func.func @transform_3(%arg0: i32) -> (i32, i32) {
    %c0_i32 = arith.constant 0 : i32
    %c0_i32_0 = arith.constant 0 : i32
    %c0_i32_1 = arith.constant 0 : i32
    return %c0_i32, %c0_i32_0 : i32, i32
  }
  func.func @transform_4(%arg0: i32) -> (i32, i32) {
    %c0_i32 = arith.constant 0 : i32
    %c0_i32_0 = arith.constant 0 : i32
    %c0_i32_1 = arith.constant 0 : i32
    return %c0_i32, %c0_i32_0 : i32, i32
  }
  func.func @transform_5(%arg0: i32) -> (i32, i32) {
    %c0_i32 = arith.constant 0 : i32
    %c0_i32_0 = arith.constant 0 : i32
    return %arg0, %c0_i32 : i32, i32
  }
}

</mosaic_0001>

<bundles_post_ra>
// kernel: tpu_custom_call.1
= control target key start
LH: loop header
LB: loop body
LE: loop exit
PB: predicated region body
PF: predicated region fallthrough
CT: control target
= control target key end

     0   :  { %v276_v1 = vmov 0.0   ;;  %vm277_vm0 = vmmov 0   ;;  %vm52_vm1 = vcmask 261120   ;;  %s341_s0 = inlined_call_operand.vmem [shape: bf16[16,32], index: 0, kind: input, shape index: {}]   ;;  %s342_s1 = inlined_call_operand.vmem [shape: bf16[32,64], index: 1, kind: input, shape index: {}]   ;;  %s343_s2 = inlined_call_operand.vmem [shape: f32[1,64], index: 2, kind: input, shape index: {}]   ;;  %s344_s3 = inlined_call_operand.vmem [shape: bf16[64,16], index: 3, kind: input, shape index: {}]   ;;  %s345_s4 = inlined_call_operand.vmem [shape: f32[1,16], index: 4, kind: input, shape index: {}]   ;;  %s346_s5 = inlined_call_operand.hbm [shape: f32[16,16], index: 5, kind: output, shape index: {}]  }
   0x1   :  { %v247_v0 = vld [vmem:[%s342_s1 + $0x8] sm:$0xff]   ;;  %222 = vmatprep.subr.bf16.mxu0 %v276_v1  ;;  %230 = vmatprep.subr.bf16.mxu1 %v276_v1  ;;  %v248_v2 = vld [vmem:[%s342_s1] sm:$0xff]   ;;  %v250_v3 = vld [vmem:[%s344_s3 + $0x18] sm:$0xff]  }
   0x2   :  { %223 = vmatpush3.bf16.msra.mxu0 %v247_v0  ;;  %226 = vmatprep.mubr.msk.bf16.mxu0 %vm277_vm0, %v276_v1  ;;  %v249_v4 = vld [vmem:[%s341_s0] sm:$0xff]  }
   0x3   :  { %224 = vmatprep.subr.bf16.mxu0 %v276_v1  ;;  %238 = vmatprep.mubr.msk.bf16.mxu1 %vm277_vm0, %v276_v1 }
   0x4   :  { %231 = vmatpush3.bf16.msra.mxu1 %v250_v3 }
   0x5   :  { %232 = vmatprep.subr.bf16.mxu1 %v276_v1 }
   0x6   :  { %225 = vmatpush3.bf16.msra.mxu0 %v248_v2 }
   0x7   :  { %10 = vsyncpa [#allocation3], 0  ;;  %v251_v5 = vld [vmem:[%s344_s3 + $0x10] sm:$0xff]   ;;  %v252_v6 = vld [vmem:[%s344_s3 + $0x8] sm:$0xff]   ;;  %vm139_vm2 = vcmask 523264   ;;  %vm184_vm3 = vcmask 130048  }
   0x8   :  { %233 = vmatpush3.bf16.msra.mxu1 %v251_v5  ;;  %v253_v7 = vld [vmem:[%s344_s3] sm:$0xff]   ;;  %s278_s3 = smov [#allocation2]  }
   0x9   :  { %227 = vmatmul.mubr.msk.bf16.vlgmr.msra.gmra.mxu0 %vm52_vm1, %v249_v4  ;;  %234 = vmatprep.subr.bf16.mxu1 %v276_v1  ;;  %v203_v8 = vld [vmem:[%s343_s2] ss:$0 sm:$0xff]  ;;  %s192_s2 = sshll.u32 %s278_s3, 4  ;;  %s193_s2 = int_to_ptr.vmem [resolvable:$true] %s192_s2 }
   0xa   :  { %v208_v18 = vld [vmem:[%s345_s4] ss:$0 sm:$0xff]  ;;  %s254_s9 = scalar_lea.vmem %s193_s2, 256  ;;  %p259_p1 = scmp.lt.s32.totalorder %s193_s2, %s193_s2 }
   0xb   :  { %p255_p0 = scmp.ne.s32.totalorder %s193_s2, %s254_s9  ;;  %p260_p2 = scmp.lt.s32.totalorder %s254_s9, %s254_s9 }
   0xc   :  { %235 = vmatpush3.bf16.msra.mxu1 %v252_v6 }
   0xd   :  { %236 = vmatprep.subr.bf16.mxu1 %v276_v1  ;;  %p261_p3 = por %p260_p2, %p259_p1 }
   0xf   :  { %p262_p4 = pnand %p261_p3, %p255_p0 }
  0x10   :  { %237 = vmatpush3.bf16.msra.mxu1 %v253_v7 }
  0xc9   :  { %v90_v9 = vpop.f32.mrf.mxu0 }
  0xca   :  { %v91_v11 = vadd.f32 %v203_v8, %v90_v9 }
  0xcb   :  { %v228_v10 = vpop.f32.mrf.mxu0 }
  0xcc   :  { %v97_v15 = vmax.f32 %v91_v11, 0.0 }
  0xcd   :  { %v93_v12 = vpop.f32.mrf.mxu0 }
  0xce   :  { %v94_v13 = vadd.f32 %v203_v8, %v93_v12 }
  0xcf   :  { %v229_v14 = vpop.f32.mrf.mxu0 }
  0xd0   :  { %v98_v16 = vmax.f32 %v94_v13, 0.0 }
  0xd2   :  { %v108_v17 = vpack.c.bf16 %v98_v16, %v97_v15 }
  0xd4   :  { %239 = vmatmul.mubr.msk.bf16.vlgmr.msra.gmra.mxu1 %vm139_vm2, %v108_v17 }
 0x194   :  { %v177_v19 = vpop.f32.mrf.mxu1 }
 0x195   :  { %v178_v20 = vadd.f32 %v208_v18, %v177_v19 }
 0x196   :  { %v240_v21 = vpop.f32.mrf.mxu1 }
 0x197   :  { %185 = vst.msk [vmem:[#allocation2] sm:$0xff] %vm184_vm3, %v178_v20 }
 0x198   :  { %v180_v22 = vpop.f32.mrf.mxu1 }
 0x199   :  { %v181_v23 = vadd.f32 %v208_v18, %v180_v22 }
 0x19a   :  { %v241_v24 = vpop.f32.mrf.mxu1 }
 0x19b   :  { %186 = vst.msk [vmem:[#allocation2 + $0x8] sm:$0xff] %vm184_vm3, %v181_v23 }
 0x19c   :  { %265 = shalt.err (!%p262_p4)
}
 0x19d   :  { %s279_s4 = smov 128   ;;  %s280_s10 = smov 8  }
 0x19e   :  { %198 = dma.vmem_to_hbm [thread:$0]  %s193_s2, 256, %s346_s5, [#allocation3], %s279_s4, %s279_s4, %s280_s10  }
 0x19f   :  { %274 = dma.done.wait [#allocation3], 256  }
 0x1a0   :  { %275 = vsyncadd [#allocation3], 4294967040 }
 0x1a1   :  { %202 = vsyncpa [#allocation3], 1 }

// kernel: tpu_custom_call.1
= control target key start
LH: loop header
LB: loop body
LE: loop exit
PB: predicated region body
PF: predicated region fallthrough
CT: control target
= control target key end

     0   :  { %v276_v1 = vmov 0.0   ;;  %vm277_vm0 = vmmov 0   ;;  %vm52_vm1 = vcmask 261120   ;;  %s341_s0 = inlined_call_operand.vmem [shape: bf16[16,32], index: 0, kind: input, shape index: {}]   ;;  %s342_s1 = inlined_call_operand.vmem [shape: bf16[32,64], index: 1, kind: input, shape index: {}]   ;;  %s343_s2 = inlined_call_operand.vmem [shape: f32[1,64], index: 2, kind: input, shape index: {}]   ;;  %s344_s3 = inlined_call_operand.vmem [shape: bf16[64,16], index: 3, kind: input, shape index: {}]   ;;  %s345_s4 = inlined_call_operand.vmem [shape: f32[1,16], index: 4, kind: input, shape index: {}]   ;;  %s346_s5 = inlined_call_operand.hbm [shape: f32[16,16], index: 5, kind: output, shape index: {}]  }
   0x1   :  { %v247_v0 = vld [vmem:[%s342_s1 + $0x8] sm:$0xff]   ;;  %222 = vmatprep.subr.bf16.mxu0 %v276_v1  ;;  %230 = vmatprep.subr.bf16.mxu1 %v276_v1  ;;  %v248_v2 = vld [vmem:[%s342_s1] sm:$0xff]   ;;  %v250_v3 = vld [vmem:[%s344_s3 + $0x18] sm:$0xff]  }
   0x2   :  { %223 = vmatpush3.bf16.msra.mxu0 %v247_v0  ;;  %226 = vmatprep.mubr.msk.bf16.mxu0 %vm277_vm0, %v276_v1  ;;  %v249_v4 = vld [vmem:[%s341_s0] sm:$0xff]  }
   0x3   :  { %224 = vmatprep.subr.bf16.mxu0 %v276_v1  ;;  %238 = vmatprep.mubr.msk.bf16.mxu1 %vm277_vm0, %v276_v1 }
   0x4   :  { %231 = vmatpush3.bf16.msra.mxu1 %v250_v3 }
   0x5   :  { %232 = vmatprep.subr.bf16.mxu1 %v276_v1 }
   0x6   :  { %225 = vmatpush3.bf16.msra.mxu0 %v248_v2 }
   0x7   :  { %10 = vsyncpa [#allocation3], 0  ;;  %v251_v5 = vld [vmem:[%s344_s3 + $0x10] sm:$0xff]   ;;  %v252_v6 = vld [vmem:[%s344_s3 + $0x8] sm:$0xff]   ;;  %vm139_vm2 = vcmask 523264   ;;  %vm184_vm3 = vcmask 130048  }
   0x8   :  { %233 = vmatpush3.bf16.msra.mxu1 %v251_v5  ;;  %v253_v7 = vld [vmem:[%s344_s3] sm:$0xff]   ;;  %s278_s3 = smov [#allocation2]  }
   0x9   :  { %227 = vmatmul.mubr.msk.bf16.vlgmr.msra.gmra.mxu0 %vm52_vm1, %v249_v4  ;;  %234 = vmatprep.subr.bf16.mxu1 %v276_v1  ;;  %v203_v8 = vld [vmem:[%s343_s2] ss:$0 sm:$0xff]  ;;  %s192_s2 = sshll.u32 %s278_s3, 4  ;;  %s193_s2 = int_to_ptr.vmem [resolvable:$true] %s192_s2 }
   0xa   :  { %v208_v18 = vld [vmem:[%s345_s4] ss:$0 sm:$0xff]  ;;  %s254_s9 = scalar_lea.vmem %s193_s2, 256  ;;  %p259_p1 = scmp.lt.s32.totalorder %s193_s2, %s193_s2 }
   0xb   :  { %p255_p0 = scmp.ne.s32.totalorder %s193_s2, %s254_s9  ;;  %p260_p2 = scmp.lt.s32.totalorder %s254_s9, %s254_s9 }
   0xc   :  { %235 = vmatpush3.bf16.msra.mxu1 %v252_v6 }
   0xd   :  { %236 = vmatprep.subr.bf16.mxu1 %v276_v1  ;;  %p261_p3 = por %p260_p2, %p259_p1 }
   0xf   :  { %p262_p4 = pnand %p261_p3, %p255_p0 }
  0x10   :  { %237 = vmatpush3.bf16.msra.mxu1 %v253_v7 }
  0xc9   :  { %v90_v9 = vpop.f32.mrf.mxu0 }
  0xca   :  { %v91_v11 = vadd.f32 %v203_v8, %v90_v9 }
  0xcb   :  { %v228_v10 = vpop.f32.mrf.mxu0 }
  0xcc   :  { %v97_v15 = vmax.f32 %v91_v11, 0.0 }
  0xcd   :  { %v93_v12 = vpop.f32.mrf.mxu0 }
  0xce   :  { %v94_v13 = vadd.f32 %v203_v8, %v93_v12 }
  0xcf   :  { %v229_v14 = vpop.f32.mrf.mxu0 }
  0xd0   :  { %v98_v16 = vmax.f32 %v94_v13, 0.0 }
  0xd2   :  { %v108_v17 = vpack.c.bf16 %v98_v16, %v97_v15 }
  0xd4   :  { %239 = vmatmul.mubr.msk.bf16.vlgmr.msra.gmra.mxu1 %vm139_vm2, %v108_v17 }
 0x194   :  { %v177_v19 = vpop.f32.mrf.mxu1 }
 0x195   :  { %v178_v20 = vadd.f32 %v208_v18, %v177_v19 }
 0x196   :  { %v240_v21 = vpop.f32.mrf.mxu1 }
 0x197   :  { %185 = vst.msk [vmem:[#allocation2] sm:$0xff] %vm184_vm3, %v178_v20 }
 0x198   :  { %v180_v22 = vpop.f32.mrf.mxu1 }
 0x199   :  { %v181_v23 = vadd.f32 %v208_v18, %v180_v22 }
 0x19a   :  { %v241_v24 = vpop.f32.mrf.mxu1 }
 0x19b   :  { %186 = vst.msk [vmem:[#allocation2 + $0x8] sm:$0xff] %vm184_vm3, %v181_v23 }
 0x19c   :  { %265 = shalt.err (!%p262_p4)
}
 0x19d   :  { %s279_s4 = smov 128   ;;  %s280_s10 = smov 8  }
 0x19e   :  { %198 = dma.vmem_to_hbm [thread:$0]  %s193_s2, 256, %s346_s5, [#allocation3], %s279_s4, %s279_s4, %s280_s10  }
 0x19f   :  { %274 = dma.done.wait [#allocation3], 256  }
 0x1a0   :  { %275 = vsyncadd [#allocation3], 4294967040 }
 0x1a1   :  { %202 = vsyncpa [#allocation3], 1 }

</bundles_post_ra>
